<compile_context>
chip_gen: v5e
topology: v5e:2x2
jax: 0.10.0
libtpu: 0.0.40
codegen_flags: <defaults>
</compile_context>

<pallas_src>
import functools

import jax
import jax.numpy as jnp
import numpy as np
from jax.experimental import pallas as pl
from jax.experimental.pallas import tpu as pltpu

EPS = 1e-5
_LANE = 128


def _bn_fold(gamma, beta, mean, var):
    scale = gamma / jnp.sqrt(var + EPS)
    shift = beta - mean * scale
    return scale, shift


def _round_up(x, m):
    return (x + m - 1) // m * m


# ----------------------------- Pallas kernel -----------------------------

def _action_head_kernel(x_ref, sc1_ref, sh1_ref, wc_ref, sh2_ref,
                        wf_ref, bf_ref, out_ref):
    # BN1 (eval) + ReLU on the flattened input rows (f32 VPU work).
    a1 = jnp.maximum(x_ref[...] * sc1_ref[...] + sh1_ref[...], 0.0)
    # 3x3 conv as ONE dense MXU matmul (bf16 operands, f32 accumulate).
    # Conv bias and BN2 scale/shift are pre-folded into wc / sh2, so a single
    # add + ReLU completes conv-bias + BN2.
    h = jnp.dot(a1.astype(jnp.bfloat16), wc_ref[...],
                preferred_element_type=jnp.float32)
    a2 = jnp.maximum(h + sh2_ref[...], 0.0)
    # fc: second MXU matmul (bf16 operands, f32 accumulate) + bias.
    out_ref[...] = (
        jnp.dot(a2.astype(jnp.bfloat16), wf_ref[...],
                preferred_element_type=jnp.float32) + bf_ref[...]
    )


# --------------------- one-time parameter preparation ---------------------

def prepare_params(params, H=5, W=5):
    """Fold BN stats + conv bias, lower conv to a dense bf16 matmul.

    Call once at model-load time. Returns (prepped_arrays, out_dim) where
    out_dim is the TRUE (un-padded) fc output width.
    """
    (g1, b1, m1, v1, w_conv, b_conv, g2, b2, m2, v2, w_fc, b_fc) = params
    C = g1.shape[0]
    O = w_conv.shape[0]            # 6
    HW = H * W

    # BN1 folded to per-input-feature scale/shift rows (1, C*H*W).
    sc1, sh1 = _bn_fold(g1, b1, m1, v1)
    sc1_rep = jnp.repeat(sc1, HW)[None, :]
    sh1_rep = jnp.repeat(sh1, HW)[None, :]

    # Block-Toeplitz dense form of the 3x3 same-padded conv on a fixed HxW grid:
    # S[k, s_in, s_out] = 1 iff input pixel s_in is tap k of output pixel s_out.
    S = np.zeros((9, HW, HW), np.float32)
    for ky in range(3):
        for kx in range(3):
            for ho in range(H):
                for wo in range(W):
                    hi, wi = ho + ky - 1, wo + kx - 1
                    if 0 <= hi < H and 0 <= wi < W:
                        S[ky * 3 + kx, hi * W + wi, ho * W + wo] = 1.0
    # W_dense[c*HW + s_in, o*HW + s_out] = sum_k w_conv[o, c, k] * S[k, s_in, s_out]
    w_dense = jnp.einsum("ock,kpq->cpoq",
                         w_conv.reshape(O, C, 9), jnp.asarray(S))
    w_dense = w_dense.reshape(C * HW, O * HW)    # (C*H*W, 6*H*W) = (100, 150)
    b_conv_row = jnp.repeat(b_conv, HW)          # (150,), PyTorch flatten order

    # BN2 folded; then fold BN2 scale into the dense conv weight and fold
    # conv bias + BN2 into one shift row:  relu((a1 @ Wc')  + shift).
    sc2, sh2 = _bn_fold(g2, b2, m2, v2)          # (150,)
    w_dense_f = w_dense * sc2[None, :]
    shift2 = b_conv_row * sc2 + sh2              # (150,)

    # fc weight as (150, out); pad tiny heads ('placing', 25) to a lane-dense
    # 128-wide output so stores are unmasked vst.  200 stays unpadded.
    out_dim = w_fc.shape[0]
    wf = w_fc.T                                  # (150, out_dim)
    bf = b_fc
    if out_dim < _LANE:
        pad = _LANE - out_dim
        wf = jnp.pad(wf, ((0, 0), (0, pad)))
        bf = jnp.pad(bf, (0, pad))

    prepped = (
        sc1_rep.astype(jnp.float32),
        sh1_rep.astype(jnp.float32),
        w_dense_f.astype(jnp.bfloat16),          # bf16 MXU operand
        shift2[None, :].astype(jnp.float32),
        wf.astype(jnp.bfloat16),                 # bf16 MXU operand
        bf[None, :].astype(jnp.float32),
    )
    return prepped, out_dim


# ---------------------------------- forward --------------------------------

def action_head_forward(x, prepped, out_dim, *, block_n=1024):
    """x: (N, C, H, W) NCHW float32; prepped/out_dim: from prepare_params."""
    sc1, sh1, wc, sh2, wf, bf = prepped
    N = x.shape[0]
    K1 = sc1.shape[1]       # C*H*W
    K2 = wc.shape[1]        # 6*H*W = 150
    out_pad = wf.shape[1]   # out_dim, or 128 for the padded 'placing' head

    x_flat = x.reshape(N, K1)                    # pure row-major reshape

    # Row tiling: single block at toy sizes; for big batches use a large tile
    # (pipeline overhead amortization) but always >= 2 grid steps so both v7x
    # TensorCores get work under the "parallel" semantics.  Even bn=2048 is
    # < 5 MiB double-buffered, well inside v5e's 16 MiB scoped-VMEM default.
    if N <= block_n:
        bn = N
    else:
        bn = min(block_n, _round_up(pl.cdiv(N, 2), 8))
    grid = (pl.cdiv(N, bn),)

    out = pl.pallas_call(
        _action_head_kernel,
        out_shape=jax.ShapeDtypeStruct((N, out_pad), jnp.float32),
        grid=grid,
        in_specs=[
            pl.BlockSpec((bn, K1), lambda i: (i, 0)),         # x rows
            pl.BlockSpec((1, K1), lambda i: (0, 0)),          # BN1 scale
            pl.BlockSpec((1, K1), lambda i: (0, 0)),          # BN1 shift
            pl.BlockSpec((K1, K2), lambda i: (0, 0)),         # dense conv weight (bf16)
            pl.BlockSpec((1, K2), lambda i: (0, 0)),          # folded conv-bias+BN2 shift
            pl.BlockSpec((K2, out_pad), lambda i: (0, 0)),    # fc weight (bf16)
            pl.BlockSpec((1, out_pad), lambda i: (0, 0)),     # fc bias
        ],
        out_specs=pl.BlockSpec((bn, out_pad), lambda i: (i, 0)),
        compiler_params=pltpu.CompilerParams(
            dimension_semantics=("parallel",)),
    )(x_flat, sc1, sh1, wc, sh2, wf, bf)

    if out_pad != out_dim:
        out = out[:, :out_dim]
    return out


# -------------------------- pure-JAX reference --------------------------

def reference_forward(x, params):
    (g1, b1, m1, v1, w_conv, b_conv, g2, b2, m2, v2, w_fc, b_fc) = params
    N = x.shape[0]
    s1, t1 = _bn_fold(g1, b1, m1, v1)
    a = jnp.maximum(x * s1[None, :, None, None] + t1[None, :, None, None], 0.0)
    conv = jax.lax.conv_general_dilated(
        a, w_conv, window_strides=(1, 1), padding=((1, 1), (1, 1)),
        dimension_numbers=("NCHW", "OIHW", "NCHW")) + b_conv[None, :, None, None]
    v = conv.reshape(N, -1)
    s2, t2 = _bn_fold(g2, b2, m2, v2)
    a2 = jnp.maximum(v * s2[None, :] + t2[None, :], 0.0)
    return a2 @ w_fc.T + b_fc[None, :]


# ---------------------------------- test ----------------------------------

def _make_params(key, C, out_dim):
    ks = jax.random.split(key, 12)
    g1 = jax.random.uniform(ks[0], (C,), jnp.float32, 0.5, 1.5)
    b1 = 0.1 * jax.random.normal(ks[1], (C,), jnp.float32)
    m1 = 0.1 * jax.random.normal(ks[2], (C,), jnp.float32)
    v1 = jax.random.uniform(ks[3], (C,), jnp.float32, 0.5, 1.5)

    w_conv = 0.1 * jax.random.normal(ks[4], (6, C, 3, 3), jnp.float32)
    b_conv = 0.1 * jax.random.normal(ks[5], (6,), jnp.float32)

    g2 = jax.random.uniform(ks[6], (150,), jnp.float32, 0.5, 1.5)
    b2 = 0.1 * jax.random.normal(ks[7], (150,), jnp.float32)
    m2 = 0.1 * jax.random.normal(ks[8], (150,), jnp.float32)
    v2 = jax.random.uniform(ks[9], (150,), jnp.float32, 0.5, 1.5)

    w_fc = 0.1 * jax.random.normal(ks[10], (out_dim, 150), jnp.float32)
    b_fc = 0.1 * jax.random.normal(ks[11], (out_dim,), jnp.float32)
    return (g1, b1, m1, v1, w_conv, b_conv, g2, b2, m2, v2, w_fc, b_fc)


if __name__ == "__main__":
    key = jax.random.PRNGKey(0)
    kx, kp_mov, kp_plc = jax.random.split(key, 3)

    N, C, H, W = 2, 4, 5, 5      # 6*H*W must equal 150 (bn_2 / fc input width)
    x = jax.random.normal(kx, (N, C, H, W), jnp.float32)

    # bf16 MXU operands => looser tolerance than the pure-f32 reference.
    TOL = dict(rtol=2e-2, atol=2e-2)

    for phase, out_dim, kp in (("moving", 200, kp_mov), ("placing", 25, kp_plc)):
        params = _make_params(kp, C, out_dim)

        # Parameter-side transforms happen ONCE, outside the jitted forward.
        prepped, true_out = prepare_params(params)
        prepped = jax.tree_util.tree_map(jax.block_until_ready, prepped)

        fwd = jax.jit(functools.partial(action_head_forward, out_dim=true_out))
        out = jax.block_until_ready(fwd(x, prepped))

        ref = reference_forward(x, params)
        assert out.shape == (N, out_dim), (phase, out.shape)
        np.testing.assert_allclose(np.asarray(out), np.asarray(ref), **TOL)

    print("KERNEL_OK")
</pallas_src>

<mosaic_0001>
module attributes {stable_mosaic.version = 11 : i64} {
  func.func @_action_head_kernel(%arg0: i32, %arg1: memref<2x100xf32, #tpu.memory_space<vmem>>, %arg2: memref<1x100xf32, #tpu.memory_space<vmem>>, %arg3: memref<1x100xf32, #tpu.memory_space<vmem>>, %arg4: memref<100x150xbf16, #tpu.memory_space<vmem>>, %arg5: memref<1x150xf32, #tpu.memory_space<vmem>>, %arg6: memref<150x200xbf16, #tpu.memory_space<vmem>>, %arg7: memref<1x200xf32, #tpu.memory_space<vmem>>, %arg8: memref<2x200xf32, #tpu.memory_space<vmem>>) attributes {dimension_semantics = [#tpu.dimension_semantics<parallel>], iteration_bounds = array<i64: 1>, scalar_prefetch = 0 : i64, scratch_operands = 0 : i64, tpu.core_type = #tpu.core_type<tc>, window_params = [{transform_indices = @transform_0, window_bounds = array<i64: 2, 100>}, {pipeline_mode = #tpu.pipeline_mode<synchronous>, transform_indices = @transform_1, window_bounds = array<i64: 1, 100>}, {pipeline_mode = #tpu.pipeline_mode<synchronous>, transform_indices = @transform_2, window_bounds = array<i64: 1, 100>}, {pipeline_mode = #tpu.pipeline_mode<synchronous>, transform_indices = @transform_3, window_bounds = array<i64: 100, 150>}, {pipeline_mode = #tpu.pipeline_mode<synchronous>, transform_indices = @transform_4, window_bounds = array<i64: 1, 150>}, {pipeline_mode = #tpu.pipeline_mode<synchronous>, transform_indices = @transform_5, window_bounds = array<i64: 150, 200>}, {pipeline_mode = #tpu.pipeline_mode<synchronous>, transform_indices = @transform_6, window_bounds = array<i64: 1, 200>}, {transform_indices = @transform_7, window_bounds = array<i64: 2, 200>}]} {
    %c0 = arith.constant 0 : index
    %c0_0 = arith.constant 0 : index
    %0 = vector.load %arg1[%c0, %c0_0] : memref<2x100xf32, #tpu.memory_space<vmem>>, vector<2x100xf32>
    %c0_1 = arith.constant 0 : index
    %c0_2 = arith.constant 0 : index
    %1 = vector.load %arg2[%c0_1, %c0_2] : memref<1x100xf32, #tpu.memory_space<vmem>>, vector<1x100xf32>
    %2 = vector.broadcast %1 : vector<1x100xf32> to vector<2x100xf32>
    %3 = arith.mulf %0, %2 : vector<2x100xf32>
    %c0_3 = arith.constant 0 : index
    %c0_4 = arith.constant 0 : index
    %4 = vector.load %arg3[%c0_3, %c0_4] : memref<1x100xf32, #tpu.memory_space<vmem>>, vector<1x100xf32>
    %5 = vector.broadcast %4 : vector<1x100xf32> to vector<2x100xf32>
    %6 = arith.addf %3, %5 : vector<2x100xf32>
    %cst = arith.constant 0.000000e+00 : f32
    %7 = vector.broadcast %cst : f32 to vector<2x100xf32>
    %8 = arith.maximumf %6, %7 : vector<2x100xf32>
    %9 = arith.truncf %8 : vector<2x100xf32> to vector<2x100xbf16>
    %c0_5 = arith.constant 0 : index
    %c0_6 = arith.constant 0 : index
    %10 = vector.load %arg4[%c0_5, %c0_6] : memref<100x150xbf16, #tpu.memory_space<vmem>>, vector<100x150xbf16>
    %cst_7 = arith.constant dense<0.000000e+00> : vector<2x150xf32>
    %11 = tpu.matmul %9, %10, %cst_7 {dimension_numbers = #tpu.dot_dimension_numbers<[1], [0], [0], [1], [0, 0, 1, 1], [], []>} : vector<2x100xbf16>, vector<100x150xbf16>, vector<2x150xf32> -> vector<2x150xf32>
    %c0_8 = arith.constant 0 : index
    %c0_9 = arith.constant 0 : index
    %12 = vector.load %arg5[%c0_8, %c0_9] : memref<1x150xf32, #tpu.memory_space<vmem>>, vector<1x150xf32>
    %13 = vector.broadcast %12 : vector<1x150xf32> to vector<2x150xf32>
    %14 = arith.addf %11, %13 : vector<2x150xf32>
    %cst_10 = arith.constant 0.000000e+00 : f32
    %15 = vector.broadcast %cst_10 : f32 to vector<2x150xf32>
    %16 = arith.maximumf %14, %15 : vector<2x150xf32>
    %17 = arith.truncf %16 : vector<2x150xf32> to vector<2x150xbf16>
    %c0_11 = arith.constant 0 : index
    %c0_12 = arith.constant 0 : index
    %18 = vector.load %arg6[%c0_11, %c0_12] : memref<150x200xbf16, #tpu.memory_space<vmem>>, vector<150x200xbf16>
    %cst_13 = arith.constant dense<0.000000e+00> : vector<2x200xf32>
    %19 = tpu.matmul %17, %18, %cst_13 {dimension_numbers = #tpu.dot_dimension_numbers<[1], [0], [0], [1], [0, 0, 1, 1], [], []>} : vector<2x150xbf16>, vector<150x200xbf16>, vector<2x200xf32> -> vector<2x200xf32>
    %c0_14 = arith.constant 0 : index
    %c0_15 = arith.constant 0 : index
    %20 = vector.load %arg7[%c0_14, %c0_15] : memref<1x200xf32, #tpu.memory_space<vmem>>, vector<1x200xf32>
    %21 = vector.broadcast %20 : vector<1x200xf32> to vector<2x200xf32>
    %22 = arith.addf %19, %21 : vector<2x200xf32>
    %c0_16 = arith.constant 0 : index
    %c0_17 = arith.constant 0 : index
    %23 = vector.load %arg8[%c0_16, %c0_17] : memref<2x200xf32, #tpu.memory_space<vmem>>, vector<2x200xf32>
    tpu.vector_store %arg8[%c0_16, %c0_17], %22 {strides = array<i32>} : memref<2x200xf32, #tpu.memory_space<vmem>>, vector<2x200xf32>,
    return
  }
  func.func @transform_0(%arg0: i32) -> (i32, i32) {
    %c0_i32 = arith.constant 0 : i32
    %c0_i32_0 = arith.constant 0 : i32
    return %arg0, %c0_i32 : i32, i32
  }
  func.func @transform_1(%arg0: i32) -> (i32, i32) {
    %c0_i32 = arith.constant 0 : i32
    %c0_i32_0 = arith.constant 0 : i32
    %c0_i32_1 = arith.constant 0 : i32
    return %c0_i32, %c0_i32_0 : i32, i32
  }
  func.func @transform_2(%arg0: i32) -> (i32, i32) {
    %c0_i32 = arith.constant 0 : i32
    %c0_i32_0 = arith.constant 0 : i32
    %c0_i32_1 = arith.constant 0 : i32
    return %c0_i32, %c0_i32_0 : i32, i32
  }
  func.func @transform_3(%arg0: i32) -> (i32, i32) {
    %c0_i32 = arith.constant 0 : i32
    %c0_i32_0 = arith.constant 0 : i32
    %c0_i32_1 = arith.constant 0 : i32
    return %c0_i32, %c0_i32_0 : i32, i32
  }
  func.func @transform_4(%arg0: i32) -> (i32, i32) {
    %c0_i32 = arith.constant 0 : i32
    %c0_i32_0 = arith.constant 0 : i32
    %c0_i32_1 = arith.constant 0 : i32
    return %c0_i32, %c0_i32_0 : i32, i32
  }
  func.func @transform_5(%arg0: i32) -> (i32, i32) {
    %c0_i32 = arith.constant 0 : i32
    %c0_i32_0 = arith.constant 0 : i32
    %c0_i32_1 = arith.constant 0 : i32
    return %c0_i32, %c0_i32_0 : i32, i32
  }
  func.func @transform_6(%arg0: i32) -> (i32, i32) {
    %c0_i32 = arith.constant 0 : i32
    %c0_i32_0 = arith.constant 0 : i32
    %c0_i32_1 = arith.constant 0 : i32
    return %c0_i32, %c0_i32_0 : i32, i32
  }
  func.func @transform_7(%arg0: i32) -> (i32, i32) {
    %c0_i32 = arith.constant 0 : i32
    %c0_i32_0 = arith.constant 0 : i32
    return %arg0, %c0_i32 : i32, i32
  }
}

</mosaic_0001>

<bundles_post_ra>
// kernel: action_head_forward.1
= control target key start
LH: loop header
LB: loop body
LE: loop exit
PB: predicated region body
PF: predicated region fallthrough
CT: control target
= control target key end

     0   :  { %vm129_vm0 = vcmask 1041408   ;;  %vm290_vm1 = vcmask 1042432   ;;  %s811_s0 = inlined_call_operand.vmem [shape: f32[2,100], index: 0, kind: input, shape index: {}]   ;;  %s812_s1 = inlined_call_operand.vmem [shape: f32[1,100], index: 1, kind: input, shape index: {}]   ;;  %s813_s2 = inlined_call_operand.vmem [shape: f32[1,100], index: 2, kind: input, shape index: {}]   ;;  %s814_s3 = inlined_call_operand.vmem [shape: bf16[100,150], index: 3, kind: input, shape index: {}]   ;;  %s815_s4 = inlined_call_operand.vmem [shape: f32[1,150], index: 4, kind: input, shape index: {}]   ;;  %s816_s5 = inlined_call_operand.vmem [shape: bf16[150,200], index: 5, kind: input, shape index: {}]   ;;  %s817_s6 = inlined_call_operand.vmem [shape: f32[1,200], index: 6, kind: input, shape index: {}]   ;;  %s818_s7 = inlined_call_operand.hbm [shape: f32[2,200], index: 7, kind: output, shape index: {}]  }
   0x1   :  { %v53_v0 = vld [vmem:[%s814_s3 + $0x60] sm:$0x33]  ;;  %v415_v3 = vld [vmem:[%s814_s3 + $0x50] sm:$0xf]  ;;  %v508_v6 = vld [vmem:[%s814_s3 + $0x54] sm:$0xf0] }
   0x2   :  { %v97_v1 = vunpack.c.l.b16 %v53_v0  ;;  %v98_v2 = vunpack.c.h.b16 %v53_v0  ;;  %v507_v7 = vld [vmem:[%s814_s3 + $0x54] sm:$0xf]  ;;  %v417_v8 = vld [vmem:[%s814_s3 + $0x58] sm:$0xf0]  ;;  %v416_v11 = vor.u32 %v508_v6, %v415_v3  ;;  %v407_v13 = vld [vmem:[%s814_s3 + $0x40] sm:$0xf] }
   0x3   :  { %v420_v12 = vor.u32 %v507_v7, %v417_v8  ;;  %v506_v14 = vld [vmem:[%s814_s3 + $0x44] sm:$0xf0]  ;;  %v505_v15 = vld [vmem:[%s814_s3 + $0x44] sm:$0xf]  ;;  %v409_v16 = vld [vmem:[%s814_s3 + $0x48] sm:$0xf0] }
   0x4   :  { %v111_v4 = vpack.c.b16 %v97_v1, %v97_v1  ;;  %v112_v5 = vpack.c.b16 %v98_v2, %v98_v2  ;;  %v399_v17 = vld [vmem:[%s814_s3 + $0x30] sm:$0xf]  ;;  %v408_v18 = vor.u32 %v506_v14, %v407_v13  ;;  %v412_v19 = vor.u32 %v505_v15, %v409_v16  ;;  %v504_v20 = vld [vmem:[%s814_s3 + $0x34] sm:$0xf0]  ;;  %v503_v22 = vld [vmem:[%s814_s3 + $0x34] sm:$0xf] }
   0x5   :  { %v481_v21 = vld [vmem:[%s816_s5 + $0x70] sm:$0xf]  ;;  %v401_v23 = vld [vmem:[%s814_s3 + $0x38] sm:$0xf0]  ;;  %v524_v24 = vld [vmem:[%s816_s5 + $0x74] sm:$0xf0]  ;;  %v400_v33 = vor.u32 %v504_v20, %v399_v17 }
   0x6   :  { %v131_v9 = vsel %vm129_vm0, %v111_v4, 0  ;;  %v134_v10 = vsel %vm129_vm0, %v112_v5, 0  ;;  %v482_v25 = vor.u32 %v524_v24, %v481_v21  ;;  %v473_v26 = vld [vmem:[%s816_s5 + $0x60] sm:$0xf]  ;;  %v522_v27 = vld [vmem:[%s816_s5 + $0x64] sm:$0xf0]  ;;  %v404_v34 = vor.u32 %v503_v22, %v401_v23 }
   0x7   :  { %137 = vmatpush.bf16.msra.mxu0 %v131_v9  ;;  %150 = vmatpush.bf16.msra.mxu1 %v134_v10  ;;  %v653_v28 = vld [vmem:[%s816_s5 + $0x90] sm:$0x77]  ;;  %v391_v29 = vld [vmem:[%s814_s3 + $0x20] sm:$0xf]  ;;  %v502_v30 = vld [vmem:[%s814_s3 + $0x24] sm:$0xf0]  ;;  %v474_v39 = vor.u32 %v522_v27, %v473_v26 }
   0x8   :  { %v528_v31 = vld [vmem:[%s812_s1] ss:$0 sm:$0xff]  ;;  %v246_v32 = vunpack.c.l.b16 %v653_v28  ;;  %v501_v35 = vld [vmem:[%s814_s3 + $0x24] sm:$0xf]  ;;  %v393_v37 = vld [vmem:[%s814_s3 + $0x28] sm:$0xf0]  ;;  %297 = vmatpush.bf16.msra.mxu2 %v482_v25  ;;  %v392_v49 = vor.u32 %v502_v30, %v391_v29 }
   0x9   :  { %v28_v36 = vld [vmem:[%s811_s0] sm:$0x3]  ;;  %v465_v40 = vld [vmem:[%s816_s5 + $0x50] sm:$0xf]  ;;  %v520_v42 = vld [vmem:[%s816_s5 + $0x54] sm:$0xf0]  ;;  %v396_v50 = vor.u32 %v501_v35, %v393_v37 }
   0xa   :  { %v529_v38 = vld [vmem:[%s813_s2] ss:$0 sm:$0xff]  ;;  %v266_v41 = vpack.c.b16 %v246_v32, %v246_v32  ;;  %v526_v44 = vld [vmem:[%s816_s5 + $0x84] sm:$0xf0]  ;;  %v33_v45 = vmul.f32 %v528_v31, %v28_v36  ;;  %v523_v47 = vld [vmem:[%s816_s5 + $0x74] sm:$0xf] }
   0xb   :  { %138 = vmatpush.bf16.msra.mxu0 %v416_v11  ;;  %151 = vmatpush.bf16.msra.mxu1 %v420_v12  ;;  %v489_v43 = vld [vmem:[%s816_s5 + $0x80] sm:$0xf]  ;;  %v483_v48 = vld [vmem:[%s816_s5 + $0x78] sm:$0xf0]  ;;  %v383_v51 = vld [vmem:[%s814_s3 + $0x10] sm:$0xf] }
   0xc   :  { %v292_v46 = vsel %vm290_vm1, %v266_v41, 0 }
   0xf   :  { %139 = vmatpush.bf16.msra.mxu0 %v408_v18  ;;  %152 = vmatpush.bf16.msra.mxu1 %v412_v19 }
  0x13   :  { %140 = vmatpush.bf16.msra.mxu0 %v400_v33  ;;  %153 = vmatpush.bf16.msra.mxu1 %v404_v34 }
  0x14   :  { %12 = vsyncpa [#allocation3], 0  ;;  %v500_v52 = vld [vmem:[%s814_s3 + $0x14] sm:$0xf0]  ;;  %v499_v53 = vld [vmem:[%s814_s3 + $0x14] sm:$0xf]  ;;  %298 = vmatpush.bf16.msra.mxu2 %v474_v39  ;;  %v466_v55 = vor.u32 %v520_v42, %v465_v40  ;;  %316 = vmatpush.bf16.msra.mxu3 %v292_v46  ;;  %v490_v56 = vor.u32 %v526_v44, %v489_v43  ;;  %v486_v59 = vor.u32 %v523_v47, %v483_v48  ;;  %v247_v17 = vunpack.c.h.b16 %v653_v28 }
  0x15   :  { %v385_v54 = vld [vmem:[%s814_s3 + $0x18] sm:$0xf0]  ;;  %v457_v57 = vld [vmem:[%s816_s5 + $0x40] sm:$0xf]  ;;  %v518_v58 = vld [vmem:[%s816_s5 + $0x44] sm:$0xf0]  ;;  %v38_v60 = vadd.f32 %v529_v38, %v33_v45  ;;  %v384_v63 = vor.u32 %v500_v52, %v383_v51 }
  0x16   :  { %v521_v61 = vld [vmem:[%s816_s5 + $0x64] sm:$0xf]  ;;  %v475_v62 = vld [vmem:[%s816_s5 + $0x68] sm:$0xf0]  ;;  %v388_v0 = vor.u32 %v499_v53, %v385_v54  ;;  %v375_v1 = vld [vmem:[%s814_s3] sm:$0xf]  ;;  %v458_v5 = vor.u32 %v518_v58, %v457_v57  ;;  %v267_v21 = vpack.c.b16 %v247_v17, %v247_v17 }
  0x17   :  { %141 = vmatpush.bf16.msra.mxu0 %v392_v49  ;;  %154 = vmatpush.bf16.msra.mxu1 %v396_v50  ;;  %v498_v2 = vld [vmem:[%s814_s3 + $0x4] sm:$0xf0]  ;;  %v497_v3 = vld [vmem:[%s814_s3 + $0x4] sm:$0xf]  ;;  %v377_v4 = vld [vmem:[%s814_s3 + $0x8] sm:$0xf0]  ;;  %v478_v8 = vor.u32 %v521_v61, %v475_v62 }
  0x18   :  { %299 = vmatpush.bf16.msra.mxu2 %v466_v55  ;;  %317 = vmatpush.bf16.msra.mxu3 %v490_v56  ;;  %v449_v6 = vld [vmem:[%s816_s5 + $0x30] sm:$0xf]  ;;  %v516_v7 = vld [vmem:[%s816_s5 + $0x34] sm:$0xf0]  ;;  %v39_v9 = vmax.f32 %v38_v60, 0.0  ;;  %v376_v10 = vor.u32 %v498_v2, %v375_v1  ;;  %v380_v11 = vor.u32 %v497_v3, %v377_v4  ;;  %vm125_vm2 = vcmask 818176  }
  0x19   :  { %v450_v12 = vor.u32 %v516_v7, %v449_v6  ;;  %v441_v13 = vld [vmem:[%s816_s5 + $0x20] sm:$0xf]  ;;  %v514_v14 = vld [vmem:[%s816_s5 + $0x24] sm:$0xf0]  ;;  %v433_v18 = vld [vmem:[%s816_s5 + $0x10] sm:$0xf] }
  0x1a   :  { %v40_v15 = vpack.c.bf16 %v39_v9, %v39_v9  ;;  %v442_v16 = vor.u32 %v514_v14, %v441_v13  ;;  %v512_v19 = vld [vmem:[%s816_s5 + $0x14] sm:$0xf0]  ;;  %v519_v20 = vld [vmem:[%s816_s5 + $0x54] sm:$0xf]  ;;  %v467_v23 = vld [vmem:[%s816_s5 + $0x58] sm:$0xf0] }
  0x1b   :  { %142 = vmatpush.bf16.msra.mxu0 %v384_v63  ;;  %155 = vmatpush.bf16.msra.mxu1 %v388_v0  ;;  %v434_v22 = vor.u32 %v512_v19, %v433_v18  ;;  %v470_v24 = vor.u32 %v519_v20, %v467_v23  ;;  %v295_v25 = vsel %vm290_vm1, %v267_v21, 0  ;;  %v425_v26 = vld [vmem:[%s816_s5] sm:$0xf]  ;;  %v510_v27 = vld [vmem:[%s816_s5 + $0x4] sm:$0xf0]  ;;  %vm286_vm3 = vcmask 179200  }
  0x1c   :  { %323 = vmatpush.bf16.msrb.mxu3 %v486_v59  ;;  %300 = vmatpush.bf16.msra.mxu2 %v458_v5  ;;  %v517_v28 = vld [vmem:[%s816_s5 + $0x44] sm:$0xf]  ;;  %v426_v29 = vor.u32 %v510_v27, %v425_v26  ;;  %v459_v30 = vld [vmem:[%s816_s5 + $0x48] sm:$0xf0]  ;;  %v515_v35 = vld [vmem:[%s816_s5 + $0x34] sm:$0xf] }
  0x1d   :  { %v525_v31 = vld [vmem:[%s816_s5 + $0x84] sm:$0xf]  ;;  %v491_v32 = vld [vmem:[%s816_s5 + $0x88] sm:$0xf0]  ;;  %v462_v33 = vor.u32 %v517_v28, %v459_v30  ;;  %v451_v36 = vld [vmem:[%s816_s5 + $0x38] sm:$0xf0] }
  0x1e   :  { %v494_v34 = vor.u32 %v525_v31, %v491_v32  ;;  %v454_v37 = vor.u32 %v515_v35, %v451_v36  ;;  %v513_v38 = vld [vmem:[%s816_s5 + $0x24] sm:$0xf]  ;;  %v443_v39 = vld [vmem:[%s816_s5 + $0x28] sm:$0xf0]  ;;  %v511_v41 = vld [vmem:[%s816_s5 + $0x14] sm:$0xf] }
  0x1f   :  { %143 = vmatpush.bf16.msra.mxu0 %v376_v10  ;;  %156 = vmatpush.bf16.msra.mxu1 %v380_v11  ;;  %v446_v40 = vor.u32 %v513_v38, %v443_v39  ;;  %v435_v42 = vld [vmem:[%s816_s5 + $0x18] sm:$0xf0]  ;;  %v509_v44 = vld [vmem:[%s816_s5 + $0x4] sm:$0xf]  ;;  %v427_v45 = vld [vmem:[%s816_s5 + $0x8] sm:$0xf0] }
  0x20   :  { %324 = vmatpush.bf16.msrb.mxu3 %v478_v8  ;;  %301 = vmatpush.bf16.msra.mxu2 %v450_v12  ;;  %v438_v43 = vor.u32 %v511_v41, %v435_v42  ;;  %v430_v46 = vor.u32 %v509_v44, %v427_v45  ;;  %v54_v47 = vld [vmem:[%s815_s4] sm:$0x3]  ;;  %vm354_vm4 = vcmask 584706   ;;  %s556_s29 = smov [#allocation2]   ;;  %s364_s9 = sshll.u32 %s818_s7, 4  ;;  %s365_s9 = int_to_ptr.hbm [resolvable:$true] %s364_s9 }
  0x21   :  { %v56_v48 = vperm.slane %v54_v47, 0  ;;  %v57_v49 = vperm.slane %v54_v47, 1  ;;  %v185_v2 = vld [vmem:[%s817_s6] sm:$0x3]  ;;  %s362_s30 = sshll.u32 %s556_s29, 4  ;;  %vm355_vm5 = vmor %vm354_vm4, %vm129_vm0  ;;  %s363_s30 = int_to_ptr.vmem [resolvable:$true] %s362_s30 }
  0x22   :  { %421 = vmatmul.msk.bf16.vlgmr.msra.gmra.mxu0 %vm125_vm2, %v40_v15  ;;  %422 = vmatmul.msk.bf16.vlgmr.msra.gmra.mxu1 %vm125_vm2, %v40_v15  ;;  %v187_v3 = vperm.slane %v185_v2, 0  ;;  %v188_v4 = vperm.slane %v185_v2, 1 }
  0x23   :  { %342 = vmatpush.bf16.msrb.mxu0 %v295_v25 }
  0x24   :  { %302 = vmatpush.bf16.msra.mxu2 %v442_v16  ;;  %325 = vmatpush.bf16.msrb.mxu3 %v470_v24 }
  0x27   :  { %343 = vmatpush.bf16.msrb.mxu0 %v494_v34 }
  0x28   :  { %303 = vmatpush.bf16.msra.mxu2 %v434_v22  ;;  %326 = vmatpush.bf16.msrb.mxu3 %v462_v33 }
  0x2c   :  { %304 = vmatpush.bf16.msra.mxu2 %v426_v29  ;;  %327 = vmatpush.bf16.msrb.mxu3 %v454_v37 }
  0x30   :  { %328 = vmatpush.bf16.msrb.mxu3 %v446_v40 }
  0x34   :  { %329 = vmatpush.bf16.msrb.mxu3 %v438_v43 }
  0x38   :  { %330 = vmatpush.bf16.msrb.mxu3 %v430_v46 }
  0x9f   :  { %v145_v50 = vpop.f32.mrf.mxu0  ;;  %v158_v51 = vpop.f32.mrf.mxu1 }
  0xa0   :  { %v146_v52 = vadd.f32 %v145_v50, %v56_v48  ;;  %v159_v53 = vadd.f32 %v158_v51, %v57_v49 }
  0xa2   :  { %v162_v54 = vmax.f32 %v146_v52, 0.0  ;;  %v163_v55 = vmax.f32 %v159_v53, 0.0 }
  0xa4   :  { %v165_v56 = vpack.c.bf16 %v163_v55, %v163_v55  ;;  %v164_v57 = vpack.c.bf16 %v162_v54, %v162_v54 }
  0xa6   :  { %305 = vmatmul.bf16.vlgmr.msra.gmra.mxu2 %v164_v57  ;;  %495 = vmatmul.msk.bf16.vlgmr.msra.gmra.mxu3 %vm286_vm3, %v165_v56 }
  0xa7   :  { %496 = vmatmul.msk.bf16.vlgmr.msrb.gmra.mxu0 %vm286_vm3, %v165_v56  ;;  %v160_v58 = vpop.f32.mrf.mxu1  ;;  %v147_v59 = vpop.f32.mrf.mxu0 }
  0xb6   :  { %331 = vmatmul.bf16.vlgmr.msrb.gmra.mxu3 %v164_v57 }
 0x124   :  { %v345_v60 = vpop.f32.mrf.mxu0 }
 0x129   :  { %v306_v61 = vpop.f32.mrf.mxu2  ;;  %v319_v62 = vpop.f32.mrf.mxu3 }
 0x12a   :  { %v307_v6 = vadd.f32 %v306_v61, %v187_v3 }
 0x12c   :  { %v347_v63 = vpop.f32.mrf.mxu0  ;;  %v320_v9 = vadd.f32 %v319_v62, %v307_v6 }
 0x131   :  { %v321_v0 = vpop.f32.mrf.mxu3  ;;  %v308_v1 = vpop.f32.mrf.mxu2 }
 0x139   :  { %v332_v5 = vpop.f32.mrf.mxu3 }
 0x13a   :  { %v333_v7 = vadd.f32 %v332_v5, %v188_v4 }
 0x13c   :  { %v346_v8 = vadd.f32 %v345_v60, %v333_v7 }
 0x13e   :  { %v351_v10 = vrot.slane %v346_v8, 6 }
 0x140   :  { %v352_v11 = vsel %vm129_vm0, %v320_v9, %v351_v10 }
 0x141   :  { %v334_v12 = vpop.f32.mrf.mxu3  ;;  %356 = vst.msk [vmem:[#allocation2] sm:$0xf] %vm355_vm5, %v352_v11 }
 0x142   :  { %367 = dma.vmem_to_hbm [thread:$0]  %s363_s30, 64, %s365_s9, [#allocation3]  }
 0x143   :  { %554 = dma.done.wait [#allocation3], 64  }
 0x144   :  { %555 = vsyncadd [#allocation3], 4294967232 }
 0x145   :  { %372 = vsyncpa [#allocation3], 1 }

</bundles_post_ra>
